<compile_context>
chip_gen: v7x
topology: tpu7x:2x2x1
jax: 0.10.0
libtpu: 0.0.40
codegen_flags: <defaults>
</compile_context>

<pallas_src>
import jax
import jax.numpy as jnp
from jax.experimental import pallas as pl
from jax.experimental.pallas import tpu as pltpu

HIDDEN = 100   # hidden width of the PyTorch module
LANE = 128     # TPU lane width


def _round_up(a, b):
    return (a + b - 1) // b * b


def attention2_kernel(x_ref, w1_ref, b1_ref, w2_ref, b2_ref, o_ref):
    """One row tile of sigmoid(relu(x @ W1 + b1) @ W2 + b2) in natural orientation.

    x_ref : (TM, dim)        contiguous row slab of x, streamed
    w1_ref: (dim, HID_PAD)   W1, hidden zero-padded to 128, resident
    b1_ref: (1, HID_PAD)     b1 row, zero-padded, resident (f32)
    w2_ref: (HID_PAD, 1)     W2 column, zero-padded, resident (f32)
    b2_ref: (1, 1)           (f32)
    o_ref : (TM, 1)
    """
    # First linear on the MXU (operands may be bf16; accumulate in f32).
    h = jnp.dot(x_ref[...], w1_ref[...], preferred_element_type=jnp.float32)
    # Bias + ReLU on the VPU in f32 (b1 broadcasts across the row/sublane axis).
    h = jnp.maximum(h + b1_ref[...], 0.0)
    # Second linear (128 -> 1) also on the MXU (K=128, N=1) instead of a VPU
    # multiply + reduce tree: the VALU, not the MXU, was the saturating slot.
    y = jnp.dot(h, w2_ref[...], preferred_element_type=jnp.float32) + b2_ref[0, 0]
    # Sigmoid on the EUP; cast back to the output dtype.
    o_ref[...] = jax.nn.sigmoid(y).astype(o_ref.dtype)


def _choose_tm(n, dim, hid_pad, x_itemsize, tm):
    """Pick the row-tile size: ~4 MiB of x per step, VMEM-budget capped."""
    n8 = _round_up(max(n, 1), 8)
    if tm is None:
        # Bandwidth target: >= ~4 MiB of x per grid step.
        tm = max((4 << 20) // max(dim * x_itemsize, 1), 8)
        # VMEM working-set budget (lane-padded: VMEM tiles are (8,128), so the minor
        # dim of every buffer pads to 128 lanes):
        #   x double buffer + f32 h intermediate (+ temp slack) + (TM,1) output
        #   double buffer, after subtracting the resident double-buffered weights.
        dim_pad = _round_up(dim, LANE)
        weight_bytes = 2 * dim * hid_pad * x_itemsize + 6 * hid_pad * 4
        budget = max((28 << 20) - weight_bytes, 1 << 20)
        per_row = (2 * dim_pad * x_itemsize      # x (double buffered)
                   + 2 * hid_pad * 4             # h intermediate (+ slack)
                   + 2 * LANE * 4)               # (TM,1) output (double buffered)
        tm = min(tm, max(budget // per_row, 8))
        # Give v7x's two TensorCores at least one tile each when there is enough
        # work to split (harmless on single-TC v5e/v6e).
        if n8 >= 2048:
            tm = min(tm, _round_up((n8 + 1) // 2, 8))
    tm = max(8, _round_up(int(tm), 8))
    return min(tm, n8)


def attention2(x, w1, b1, w2, b2, *, tm=None):
    """Pallas port of Attention2.forward.

    x : (N, dim) f32 or bf16 (bf16 only if the producer already supplies it that way)
    w1: (dim, 100)        b1: (100,)     (first nn.Linear, transposed vs torch layout)
    w2: (100, 1)          b2: scalar / (1,) / (1, 1)
    tm: optional row tile override (rounded up to a multiple of 8)
    """
    n, dim = x.shape
    hid = w1.shape[1]
    hid_pad = _round_up(hid, LANE)          # 100 -> 128 (zero pad: exact result)
    out_dtype = x.dtype
    x_itemsize = jnp.dtype(x.dtype).itemsize

    # --- tiny one-off weight repacking (<= dim*128 elements; never touches x) ---
    w1p = jnp.pad(w1, ((0, 0), (0, hid_pad - hid))).astype(x.dtype)               # (dim, HID_PAD)
    b1r = jnp.pad(jnp.reshape(b1, (1, hid)).astype(jnp.float32),
                  ((0, 0), (0, hid_pad - hid)))                                   # (1, HID_PAD)
    w2c = jnp.pad(jnp.reshape(w2, (hid, 1)).astype(jnp.float32),
                  ((0, hid_pad - hid), (0, 0)))                                   # (HID_PAD, 1)
    b2c = jnp.reshape(b2, (1, 1)).astype(jnp.float32)                             # (1, 1)

    tm_eff = _choose_tm(n, dim, hid_pad, x_itemsize, tm)
    num_tiles = pl.cdiv(n, tm_eff)

    out = pl.pallas_call(
        attention2_kernel,
        out_shape=jax.ShapeDtypeStruct((n, 1), out_dtype),
        grid=(num_tiles,),
        in_specs=[
            pl.BlockSpec((tm_eff, dim), lambda i: (i, 0)),      # x slab, streamed, contiguous DMA
            pl.BlockSpec((dim, hid_pad), lambda i: (0, 0)),     # W1, resident
            pl.BlockSpec((1, hid_pad), lambda i: (0, 0)),       # b1, resident
            pl.BlockSpec((hid_pad, 1), lambda i: (0, 0)),       # W2, resident
            pl.BlockSpec((1, 1), lambda i: (0, 0)),             # b2, resident
        ],
        out_specs=pl.BlockSpec((tm_eff, 1), lambda i: (i, 0)),
        compiler_params=pltpu.CompilerParams(
            dimension_semantics=("parallel",),                  # megacore sharding on v7x
            vmem_limit_bytes=48 * 1024 * 1024,                  # > v5e's 16 MiB default, < v7x 56 MiB ceiling
        ),
    )(x, w1p, b1r, w2c, b2c)

    return out  # already exactly (N, 1)


def attention2_ref(x, w1, b1, w2, b2):
    h = jnp.maximum(x @ w1 + jnp.reshape(b1, (1, -1)), 0.0)
    return jax.nn.sigmoid(h @ jnp.reshape(w2, (-1, 1)) + jnp.reshape(b2, (1, 1)))


if __name__ == "__main__":
    key = jax.random.PRNGKey(0)
    k_x, k_w1, k_b1, k_w2, k_b2, k_x2 = jax.random.split(key, 6)

    N, DIM = 8, 32
    x = jax.random.normal(k_x, (N, DIM), dtype=jnp.float32)

    # Deterministic parameter init (uniform, roughly matching nn.Linear scale).
    bound1 = 1.0 / (DIM ** 0.5)
    w1 = jax.random.uniform(k_w1, (DIM, HIDDEN), jnp.float32, -bound1, bound1)
    b1 = jax.random.uniform(k_b1, (HIDDEN,), jnp.float32, -bound1, bound1)
    bound2 = 1.0 / (HIDDEN ** 0.5)
    w2 = jax.random.uniform(k_w2, (HIDDEN, 1), jnp.float32, -bound2, bound2)
    b2 = jax.random.uniform(k_b2, (1,), jnp.float32, -bound2, bound2)

    # Small-N path (single tile, TM auto-clamped to the 8-row sublane minimum).
    out = attention2(x, w1, b1, w2, b2)
    jax.block_until_ready(out)
    ref = attention2_ref(x, w1, b1, w2, b2)
    assert out.shape == (N, 1)
    assert jnp.allclose(out, ref, atol=1e-3, rtol=1e-3), (out, ref)

    # Multi-tile path with a ragged tail: grid of 3 tiles, last block partially
    # out of bounds (300 = 2*128 + 44) -> exercises masked boundary handling.
    N2 = 300
    x2 = jax.random.normal(k_x2, (N2, DIM), dtype=jnp.float32)
    out2 = attention2(x2, w1, b1, w2, b2, tm=128)
    jax.block_until_ready(out2)
    ref2 = attention2_ref(x2, w1, b1, w2, b2)
    assert out2.shape == (N2, 1)
    assert jnp.allclose(out2, ref2, atol=1e-3, rtol=1e-3), (out2, ref2)

    # bf16 path: x already arrives in bf16 from the producer (no extra cast pass
    # over x inside the wrapper); W1 (tiny, resident) is cast to match.
    out_bf16 = attention2(x2.astype(jnp.bfloat16), w1, b1, w2, b2, tm=128)
    jax.block_until_ready(out_bf16)
    assert out_bf16.shape == (N2, 1)
    assert jnp.allclose(out_bf16.astype(jnp.float32), ref2, atol=5e-2, rtol=5e-2)

    # Default auto-tiling path (TM chosen from the bandwidth/VMEM budget formula).
    out3 = attention2(x2, w1, b1, w2, b2)
    jax.block_until_ready(out3)
    assert jnp.allclose(out3, ref2, atol=1e-3, rtol=1e-3)

    print("KERNEL_OK")
</pallas_src>

<mosaic_0001>
module attributes {stable_mosaic.version = 11 : i64} {
  func.func @attention2_kernel(%arg0: i32, %arg1: memref<8x32xf32, #tpu.memory_space<vmem>>, %arg2: memref<32x128xf32, #tpu.memory_space<vmem>>, %arg3: memref<1x128xf32, #tpu.memory_space<vmem>>, %arg4: memref<128x1xf32, #tpu.memory_space<vmem>>, %arg5: memref<1x1xf32, #tpu.memory_space<vmem>>, %arg6: memref<8x1xf32, #tpu.memory_space<vmem>>) attributes {dimension_semantics = [#tpu.dimension_semantics<parallel>], iteration_bounds = array<i64: 1>, scalar_prefetch = 0 : i64, scratch_operands = 0 : i64, tpu.core_type = #tpu.core_type<tc>, window_params = [{transform_indices = @transform_0, window_bounds = array<i64: 8, 32>}, {pipeline_mode = #tpu.pipeline_mode<synchronous>, transform_indices = @transform_1, window_bounds = array<i64: 32, 128>}, {pipeline_mode = #tpu.pipeline_mode<synchronous>, transform_indices = @transform_2, window_bounds = array<i64: 1, 128>}, {pipeline_mode = #tpu.pipeline_mode<synchronous>, transform_indices = @transform_3, window_bounds = array<i64: 128, 1>}, {pipeline_mode = #tpu.pipeline_mode<synchronous>, transform_indices = @transform_4, window_bounds = array<i64: 1, 1>}, {transform_indices = @transform_5, window_bounds = array<i64: 8, 1>}]} {
    %c0 = arith.constant 0 : index
    %c0_0 = arith.constant 0 : index
    %0 = vector.load %arg1[%c0, %c0_0] : memref<8x32xf32, #tpu.memory_space<vmem>>, vector<8x32xf32>
    %c0_1 = arith.constant 0 : index
    %c0_2 = arith.constant 0 : index
    %1 = vector.load %arg2[%c0_1, %c0_2] : memref<32x128xf32, #tpu.memory_space<vmem>>, vector<32x128xf32>
    %cst = arith.constant dense<0.000000e+00> : vector<8x128xf32>
    %2 = tpu.matmul %0, %1, %cst {dimension_numbers = #tpu.dot_dimension_numbers<[1], [0], [0], [1], [0, 0, 1, 1], [], []>} : vector<8x32xf32>, vector<32x128xf32>, vector<8x128xf32> -> vector<8x128xf32>
    %c0_3 = arith.constant 0 : index
    %c0_4 = arith.constant 0 : index
    %3 = vector.load %arg3[%c0_3, %c0_4] : memref<1x128xf32, #tpu.memory_space<vmem>>, vector<1x128xf32>
    %4 = vector.broadcast %3 : vector<1x128xf32> to vector<8x128xf32>
    %5 = arith.addf %2, %4 : vector<8x128xf32>
    %cst_5 = arith.constant 0.000000e+00 : f32
    %6 = vector.broadcast %cst_5 : f32 to vector<8x128xf32>
    %7 = arith.maximumf %5, %6 : vector<8x128xf32>
    %c0_6 = arith.constant 0 : index
    %c0_7 = arith.constant 0 : index
    %8 = vector.load %arg4[%c0_6, %c0_7] : memref<128x1xf32, #tpu.memory_space<vmem>>, vector<128x1xf32>
    %cst_8 = arith.constant dense<0.000000e+00> : vector<8x1xf32>
    %9 = tpu.matmul %7, %8, %cst_8 {dimension_numbers = #tpu.dot_dimension_numbers<[1], [0], [0], [1], [0, 0, 1, 1], [], []>} : vector<8x128xf32>, vector<128x1xf32>, vector<8x1xf32> -> vector<8x1xf32>
    %c0_9 = arith.constant 0 : index
    %c0_10 = arith.constant 0 : index
    %10 = vector.load %arg5[%c0_9, %c0_10] : memref<1x1xf32, #tpu.memory_space<vmem>>, vector<1x1xf32>
    %11 = vector.extract %10[0, 0] : f32 from vector<1x1xf32>
    %12 = vector.broadcast %11 : f32 to vector<8x1xf32>
    %13 = arith.addf %9, %12 : vector<8x1xf32>
    %14 = arith.negf %13 : vector<8x1xf32>
    %15 = math.exp %14 : vector<8x1xf32>
    %cst_11 = arith.constant 1.000000e+00 : f32
    %16 = vector.broadcast %cst_11 : f32 to vector<8x1xf32>
    %17 = arith.addf %16, %15 : vector<8x1xf32>
    %18 = arith.divf %16, %17 : vector<8x1xf32>
    %c0_12 = arith.constant 0 : index
    %c0_13 = arith.constant 0 : index
    %19 = vector.load %arg6[%c0_12, %c0_13] : memref<8x1xf32, #tpu.memory_space<vmem>>, vector<8x1xf32>
    tpu.vector_store %arg6[%c0_12, %c0_13], %18 {strides = array<i32>} : memref<8x1xf32, #tpu.memory_space<vmem>>, vector<8x1xf32>,
    return
  }
  func.func @transform_0(%arg0: i32) -> (i32, i32) {
    %c0_i32 = arith.constant 0 : i32
    %c0_i32_0 = arith.constant 0 : i32
    return %arg0, %c0_i32 : i32, i32
  }
  func.func @transform_1(%arg0: i32) -> (i32, i32) {
    %c0_i32 = arith.constant 0 : i32
    %c0_i32_0 = arith.constant 0 : i32
    %c0_i32_1 = arith.constant 0 : i32
    return %c0_i32, %c0_i32_0 : i32, i32
  }
  func.func @transform_2(%arg0: i32) -> (i32, i32) {
    %c0_i32 = arith.constant 0 : i32
    %c0_i32_0 = arith.constant 0 : i32
    %c0_i32_1 = arith.constant 0 : i32
    return %c0_i32, %c0_i32_0 : i32, i32
  }
  func.func @transform_3(%arg0: i32) -> (i32, i32) {
    %c0_i32 = arith.constant 0 : i32
    %c0_i32_0 = arith.constant 0 : i32
    %c0_i32_1 = arith.constant 0 : i32
    return %c0_i32, %c0_i32_0 : i32, i32
  }
  func.func @transform_4(%arg0: i32) -> (i32, i32) {
    %c0_i32 = arith.constant 0 : i32
    %c0_i32_0 = arith.constant 0 : i32
    %c0_i32_1 = arith.constant 0 : i32
    return %c0_i32, %c0_i32_0 : i32, i32
  }
  func.func @transform_5(%arg0: i32) -> (i32, i32) {
    %c0_i32 = arith.constant 0 : i32
    %c0_i32_0 = arith.constant 0 : i32
    return %arg0, %c0_i32 : i32, i32
  }
}

</mosaic_0001>

<bundles_post_ra>
// kernel: tpu_custom_call.1
= control target key start
LH: loop header
LB: loop body
LE: loop exit
PB: predicated region body
PF: predicated region fallthrough
CT: control target
= control target key end

     0   :  { %v320_v0 = vmov 0.0|0.0   ;;  %vm321_vm0 = vmmov 0   ;;  %v322_v4 = vmov 0.0   ;;  %vm34_vm1 = vcmask 261120   ;;  %s425_s1 = inlined_call_operand.vmem [shape: f32[32,128], index: 1, kind: input, shape index: {}]   ;;  %s426_s3 = inlined_call_operand.vmem [shape: f32[128,1], index: 3, kind: input, shape index: {}]   ;;  %s427_s0 = inlined_call_operand.vmem [shape: f32[8,32], index: 0, kind: input, shape index: {}]   ;;  %s428_s4 = inlined_call_operand.<no memory space> [shape: f32[1,1], index: 4, kind: input, shape index: {}]   ;;  %s429_s2 = inlined_call_operand.vmem [shape: f32[1,128], index: 2, kind: input, shape index: {}]   ;;  %s430_s5 = inlined_call_operand.vmem [shape: f32[8,1], index: 5, kind: output, shape index: {}]  }
   0x1   :  { %281 = vmatprep.subr.bf16.mxu0 %v320_v0  ;;  %v23_v1 = vld [vmem:[%s425_s1] sm:$0xff]  ;;  %v24_v2 = vld [vmem:[%s425_s1 + $0x8] sm:$0xff]  ;;  %v25_v3 = vld [vmem:[%s425_s1 + $0x10] sm:$0xff]  ;;  %243 = vmatprep.mubr.msk.f32.mxu0 %vm321_vm0, %v322_v4  ;;  %v10_v33 = vstv %s428_s4  ;;  %vm204_vm2 = vcmask 7168  }
   0x2   :  { %v282_v5 = vpack.c.bf16 %v24_v2, %v23_v1  ;;  %v26_v6 = vld [vmem:[%s425_s1 + $0x18] sm:$0xff]  ;;  %287 = vmatprep.subr.bf16.mxu1 %v320_v0  ;;  %v109_v7 = vld [vmem:[%s426_s3] sm:$0xff]  ;;  %278 = vmatprep.mubr.msk.f32.mxu1 %vm321_vm0, %v322_v4  ;;  %v110_v8 = vld [vmem:[%s426_s3 + $0x8] sm:$0xff]  ;;  %11 = vst [vmem:[#allocation2] sm:$0x1] %v10_v33 }
   0x3   :  { %v111_v9 = vld [vmem:[%s426_s3 + $0x10] sm:$0xff]  ;;  %v112_v10 = vld [vmem:[%s426_s3 + $0x18] sm:$0xff]  ;;  %v285_v11 = vpack.c.bf16 %v26_v6, %v25_v3  ;;  %v288_v12 = vpack.c.bf16 %v110_v8, %v109_v7  ;;  %v113_v14 = vld [vmem:[%s426_s3 + $0x20] sm:$0xff] }
   0x4   :  { %283 = vmatpush3.bf16.msra.mxu0 %v282_v5  ;;  %v291_v13 = vpack.c.bf16 %v112_v10, %v111_v9  ;;  %v114_v15 = vld [vmem:[%s426_s3 + $0x28] sm:$0xff]  ;;  %v22_v16 = vld [vmem:[%s427_s0] sm:$0xff]  ;;  %v115_v18 = vld [vmem:[%s426_s3 + $0x30] sm:$0xff] }
   0x5   :  { %284 = vmatprep.subr.bf16.mxu0 %v320_v0  ;;  %289 = vmatpush3.bf16.msra.mxu1 %v288_v12  ;;  %v294_v17 = vpack.c.bf16 %v114_v15, %v113_v14  ;;  %v116_v19 = vld [vmem:[%s426_s3 + $0x38] sm:$0xff]  ;;  %v117_v21 = vld [vmem:[%s426_s3 + $0x40] sm:$0xff]  ;;  %v118_v22 = vld [vmem:[%s426_s3 + $0x48] sm:$0xff] }
   0x6   :  { %290 = vmatprep.subr.bf16.mxu1 %v320_v0  ;;  %v297_v20 = vpack.c.bf16 %v116_v19, %v115_v18  ;;  %v300_v23 = vpack.c.bf16 %v118_v22, %v117_v21  ;;  %v119_v24 = vld [vmem:[%s426_s3 + $0x50] sm:$0xff]  ;;  %v120_v25 = vld [vmem:[%s426_s3 + $0x58] sm:$0xff]  ;;  %v121_v27 = vld [vmem:[%s426_s3 + $0x60] sm:$0xff] }
   0x7   :  { %v303_v26 = vpack.c.bf16 %v120_v25, %v119_v24  ;;  %v122_v28 = vld [vmem:[%s426_s3 + $0x68] sm:$0xff]  ;;  %v123_v30 = vld [vmem:[%s426_s3 + $0x70] sm:$0xff]  ;;  %v124_v31 = vld [vmem:[%s426_s3 + $0x78] sm:$0xff] }
   0x8   :  { %286 = vmatpush3.bf16.msra.mxu0 %v285_v11  ;;  %v306_v29 = vpack.c.bf16 %v122_v28, %v121_v27  ;;  %v309_v32 = vpack.c.bf16 %v124_v31, %v123_v30  ;;  %v210_v35 = vld [vmem:[%s429_s2] ss:$0 sm:$0xff] }
   0x9   :  { %292 = vmatpush3.bf16.msra.mxu1 %v291_v13  ;;  %v125_v34 = vld [vmem:[#allocation2] sm:$0x1] }
   0xa   :  { %293 = vmatprep.subr.bf16.mxu1 %v320_v0  ;;  %311 = vpush %v125_v34 }
   0xb   :  { %244 = vmatmul.mubr.msk.f32.vlgmr.msra.gmra.mrb[0].mxu0 %vm34_vm1, %v22_v16 }
   0xd   :  { %295 = vmatpush3.bf16.msra.mxu1 %v294_v17 }
   0xe   :  { %296 = vmatprep.subr.bf16.mxu1 %v320_v0 }
  0x11   :  { %298 = vmatpush3.bf16.msra.mxu1 %v297_v20 }
  0x12   :  { %299 = vmatprep.subr.bf16.mxu1 %v320_v0 }
  0x15   :  { %301 = vmatpush3.bf16.msra.mxu1 %v300_v23 }
  0x16   :  { %302 = vmatprep.subr.bf16.mxu1 %v320_v0 }
  0x19   :  { %304 = vmatpush3.bf16.msra.mxu1 %v303_v26 }
  0x1a   :  { %305 = vmatprep.subr.bf16.mxu1 %v320_v0 }
  0x1d   :  { %307 = vmatpush3.bf16.msra.mxu1 %v306_v29 }
  0x1e   :  { %308 = vmatprep.subr.bf16.mxu1 %v320_v0 }
  0x21   :  { %310 = vmatpush3.bf16.msra.mxu1 %v309_v32 }
  0x3b   :  { %s312_s11 = spop %311 }
  0x3c   :  { %v127_v40 = vstv %s312_s11 }
  0xde   :  { %v104_v36 = vpop.f32.mrb[0].mxu0 }
  0xdf   :  { %v105_v37 = vadd.f32 %v210_v35, %v104_v36  ;;  %v245_v38 = vpop.f32.mrb[1].mxu0 }
  0xe1   :  { %v108_v39 = vmax.f32 %v105_v37, 0.0 }
  0xe3   :  { %279 = vmatmul.mubr.f32.vlgmr.msra.gmra.mrb[0].mxu1 %v108_v39 }
 0x1b6   :  { %v194_v41 = vpop.f32.mrb[0].mxu1 }
 0x1b7   :  { %v195_v42 = vadd.f32 %v194_v41, %v127_v40  ;;  %v280_v43 = vpop.f32.mrb[1].mxu1 }
 0x1b9   :  { %v212_v44 = vmul.f32 -1.442695, %v195_v42 }
 0x1bb   :  { %316 = vpow2.f32 %v212_v44 }
 0x1c5   :  { %v317_v45 = vpop.eup %316 }
 0x1c6   :  { %v201_v46 = vadd.f32 1.0, %v317_v45 }
 0x1c8   :  { %318 = vrcp.f32 %v201_v46 }
 0x1d2   :  { %v319_v47 = vpop.eup %318 }
 0x1d3   :  { %205 = vst.msk [vmem:[%s430_s5] sm:$0xff] %vm204_vm2, %v319_v47 }

</bundles_post_ra>
